<compile_context>
chip_gen: v7x
topology: tpu7x:2x2x1
jax: 0.10.0
libtpu: 0.0.40
codegen_flags: <defaults>
</compile_context>

<pallas_src>
import jax
import jax.numpy as jnp
from jax import lax
from jax.experimental import pallas as pl
from jax.experimental.pallas import tpu as pltpu


def _round_up(x, m):
    return ((x + m - 1) // m) * m


def _pick_tile(n, cap):
    # largest 128-multiple tile <= cap that divides n (n is always a 128 multiple here)
    for t in (cap, cap // 2, cap // 4, 128):
        if t <= n and n % t == 0:
            return t
    return n


# --------------------------------------------------------------------------
# Kernel 1: channel -> feature projection of the 8x8-pooled image.
# The RAFT input transforms (ConvertImageDtype + Normalize(0.5, 0.5) == 2*x - 1)
# and the 1/sqrt(D) correlation temperature are folded into (wf_eff, bias_eff)
# by the caller; operands are bf16, accumulation f32.
# --------------------------------------------------------------------------
def _project_kernel(pooled_ref, wf_ref, bias_ref, feat_ref):
    feat = jnp.dot(pooled_ref[...], wf_ref[...], preferred_element_type=jnp.float32)
    feat_ref[...] = (feat + bias_ref[...]).astype(feat_ref.dtype)


# --------------------------------------------------------------------------
# Kernel 2: RAFT core proxy — flash-style all-pairs correlation with online
# softmax and soft-argmax flow at 1/8 resolution.  Keys live on sublanes and
# queries on lanes so the flow output block (2, TQ) is lane-dense.
# ck_ref rows are [x, y, valid]; padded key columns are all-zero, so they add
# nothing to numerator or denominator and no logit mask is needed (the running
# max shift they may induce cancels in the numerator/denominator ratio).
# --------------------------------------------------------------------------
def _flow_kernel(ft_ref, fc_ref, ck_ref, cq_ref, flow_ref, m_scr, acc_scr):
    ki = pl.program_id(2)

    @pl.when(ki == 0)
    def _():
        m_scr[...] = jnp.full_like(m_scr, -jnp.inf)
        acc_scr[...] = jnp.zeros_like(acc_scr)

    # correlation logits (TK, TQ): bf16 MXU operands, f32 accumulation.
    # 1/sqrt(D) scale is already folded into the features.
    dn = (((1,), (1,)), ((), ()))
    s = lax.dot_general(fc_ref[...], ft_ref[...], dn,
                        preferred_element_type=jnp.float32)

    m_prev = m_scr[...]                                           # (1, TQ)
    m_new = jnp.maximum(m_prev, jnp.max(s, axis=0, keepdims=True))
    alpha = jnp.exp(m_prev - m_new)                               # (1, TQ) f32
    # bf16 exp: EUP bf16 path on v6e/v7x; p feeds a bf16 MXU matmul anyway.
    p = jnp.exp((s - m_new).astype(jnp.bfloat16))                 # (TK, TQ) bf16
    # (3, TK) @ (TK, TQ) -> (3, TQ): rows = [sum p*x, sum p*y, sum p] in one MXU dot
    # (denominator folded into the MXU via the ones row of ck).
    acc_scr[...] = alpha * acc_scr[...] + jnp.dot(
        ck_ref[...], p, preferred_element_type=jnp.float32)
    m_scr[...] = m_new

    @pl.when(ki == pl.num_programs(2) - 1)
    def _():
        inv_l = pl.reciprocal(acc_scr[2:3, :], approx=True)       # EUP slot
        flow_ref[...] = acc_scr[0:2, :] * inv_l - cq_ref[...]


# --------------------------------------------------------------------------
# Kernel 3: IBVS controller (ibvs_Lmean).  Builds the (8, 2*Npad) slab
#   rows 0..5 = columns of (L_cur + L_tar)/2 (x-rows in lanes [0:Npad],
#               y-rows in lanes [Npad:2*Npad]),
#   row 6     = feature error e = p_tar - p_cur,
# with direct sublane writes into VMEM scratch, then one MXU dot A @ A^T
# yields G = L^T L ([0:6,0:6]) and b = L^T e (column 6) in a single output.
# Only the two structurally-zero half rows are zeroed; slab row 7 is never
# read downstream (only out[:7,:7] is consumed), so it is left untouched.
# --------------------------------------------------------------------------
def _ibvs_kernel(z_ref, intr_ref, pts_ref, out_ref, a_scr):
    b = pl.program_id(0)
    inv_zc = 1.0 / z_ref[b, 0]
    inv_zt = 1.0 / z_ref[b, 1]
    cx = intr_ref[0]
    cy = intr_ref[1]
    inv_fx = 1.0 / intr_ref[2]
    inv_fy = 1.0 / intr_ref[3]

    half = a_scr.shape[1] // 2

    # pixel -> normalized camera coordinates, in-kernel
    xc = (pts_ref[0:1, :] - cx) * inv_fx        # (1, Npad)
    yc = (pts_ref[1:2, :] - cy) * inv_fy
    xt = (pts_ref[2:3, :] - cx) * inv_fx
    yt = (pts_ref[3:4, :] - cy) * inv_fy
    msk = pts_ref[4:5, :]                       # 1.0 = valid feature point

    zhalf = jnp.zeros((1, half), jnp.float32)
    a_scr[0:1, half:2 * half] = zhalf           # y-rows have 0 in column 0
    a_scr[1:2, 0:half] = zhalf                  # x-rows have 0 in column 1

    # x-image rows of (L_cur + L_tar)/2  -> lanes [0:half]
    a_scr[0:1, 0:half] = (-0.5 * (inv_zc + inv_zt)) * msk
    a_scr[2:3, 0:half] = 0.5 * (xc * inv_zc + xt * inv_zt) * msk
    a_scr[3:4, 0:half] = 0.5 * (xc * yc + xt * yt) * msk
    a_scr[4:5, 0:half] = (-0.5 * ((1.0 + xc * xc) + (1.0 + xt * xt))) * msk
    a_scr[5:6, 0:half] = 0.5 * (yc + yt) * msk
    a_scr[6:7, 0:half] = (xt - xc) * msk

    # y-image rows of (L_cur + L_tar)/2  -> lanes [half:2*half]
    a_scr[1:2, half:2 * half] = (-0.5 * (inv_zc + inv_zt)) * msk
    a_scr[2:3, half:2 * half] = 0.5 * (yc * inv_zc + yt * inv_zt) * msk
    a_scr[3:4, half:2 * half] = 0.5 * ((1.0 + yc * yc) + (1.0 + yt * yt)) * msk
    a_scr[4:5, half:2 * half] = -0.5 * (xc * yc + xt * yt) * msk
    a_scr[5:6, half:2 * half] = -0.5 * (xc + xt) * msk
    a_scr[6:7, half:2 * half] = (yt - yc) * msk

    A = a_scr[...]
    dn = (((1,), (1,)), ((), ()))
    out_ref[...] = lax.dot_general(A, A, dn, preferred_element_type=jnp.float32)


# --------------------------------------------------------------------------
# Wrappers / glue
# --------------------------------------------------------------------------
def preprocess(image):
    # faithful to RaftIBVS.preprocess (pads by H%8 / W%8, split top/bottom, left/right)
    _, _, H, W = image.shape
    hmod8 = H % 8
    p_t = hmod8 // 2
    p_b = hmod8 - p_t
    wmod8 = W % 8
    p_l = wmod8 // 2
    p_r = wmod8 - p_l
    if hmod8 > 0 or wmod8 > 0:
        image = jnp.pad(image, ((0, 0), (0, 0), (p_t, p_b), (p_l, p_r)))
    return image


def predict_flow(tar_img, cur_img, wf):
    B, C, H, W = tar_img.shape
    # RAFT needs H, W divisible by 8; the module's preprocess only guarantees that for
    # H % 8 in {0, 4}, so pad the remainder internally and crop the flow back.
    ph = (-H) % 8
    pw = (-W) % 8
    if ph or pw:
        pad = ((0, 0), (0, 0), (0, ph), (0, pw))
        tar_img = jnp.pad(tar_img, pad)
        cur_img = jnp.pad(cur_img, pad)
    Hp, Wp = H + ph, W + pw
    H8, W8 = Hp // 8, Wp // 8
    N8 = H8 * W8
    NQ = _round_up(N8, 128)          # padded 1/8-grid point count (MXU/lane aligned)
    D = wf.shape[1]
    Cp = _round_up(C, 8)             # pad the channel contraction dim

    # Fold transforms (ConvertImageDtype + Normalize(0.5, 0.5) == 2*x - 1) and the
    # 1/sqrt(D) correlation temperature into the projection:
    #   sqrt(scale)*(2*pool(x) - 1) @ wf == pool(x) @ (2*rs*wf) - rs*sum(wf),
    # with rs = D**-0.25 (so q.k picks up scale = 1/sqrt(D)).
    # TODO(synk): if the real pipeline feeds uint8 images, fold the 1/255 scale here too.
    rs = float(D) ** -0.25
    wf32 = wf.astype(jnp.float32)
    wf_eff = jnp.pad(2.0 * rs * wf32, ((0, Cp - C), (0, 0))).astype(jnp.bfloat16)
    bias_eff = (-rs) * jnp.sum(wf32, axis=0, keepdims=True)        # (1, D) f32

    # 8x8 average pooling as a cheap separable XLA window mean (replaces the dense
    # (NQ, HW) pooling-matrix matmul: no sparse MXU work, no VMEM-resident HW block).
    imgs = jnp.concatenate([tar_img, cur_img], axis=0).astype(jnp.float32)
    pooled = imgs.reshape(2 * B, C, H8, 8, W8, 8).mean(axis=(3, 5))  # (2B, C, H8, W8)
    pooled = pooled.reshape(2 * B, C, N8).transpose(0, 2, 1)         # (2B, N8, C)
    pooled = jnp.pad(pooled, ((0, 0), (0, NQ - N8), (0, Cp - C))).astype(jnp.bfloat16)

    feats = pl.pallas_call(
        _project_kernel,
        out_shape=jax.ShapeDtypeStruct((2 * B, NQ, D), jnp.bfloat16),
        grid=(2 * B,),
        in_specs=[
            pl.BlockSpec((None, NQ, Cp), lambda i: (i, 0, 0)),
            pl.BlockSpec((Cp, D), lambda i: (0, 0)),
            pl.BlockSpec((1, D), lambda i: (0, 0)),
        ],
        out_specs=pl.BlockSpec((None, NQ, D), lambda i: (i, 0, 0)),
        compiler_params=pltpu.CompilerParams(dimension_semantics=("parallel",)),
    )(pooled, wf_eff, bias_eff)

    # 1/8-resolution coordinate slabs, lane-dense.
    # Key slab rows = [x, y, valid]; padded key columns are all-zero so the flow
    # kernel needs no logit mask (they contribute 0 to numerator and denominator).
    idx = jnp.arange(NQ)
    xs = (idx % W8).astype(jnp.float32)
    ys = (idx // W8).astype(jnp.float32)
    valid = (idx < N8).astype(jnp.float32)
    ckv = jnp.stack([xs * valid, ys * valid, valid], axis=0).astype(jnp.bfloat16)
    cq = jnp.stack([xs, ys], axis=0)                                 # (2, NQ) f32

    TQ = _pick_tile(NQ, 128)     # keeps the live (TK, TQ) f32 logits tile <= ~32 vregs
    TK = _pick_tile(NQ, 256)

    flow_q = pl.pallas_call(
        _flow_kernel,
        out_shape=jax.ShapeDtypeStruct((B, 2, NQ), jnp.float32),
        grid=(B, NQ // TQ, NQ // TK),
        in_specs=[
            # queries = target-image features
            pl.BlockSpec((None, TQ, D), lambda b, qi, ki: (b, qi, 0)),
            # keys = current-image features (second half of the stacked feats array)
            pl.BlockSpec((None, TK, D), lambda b, qi, ki: (b + B, ki, 0)),
            pl.BlockSpec((3, TK), lambda b, qi, ki: (0, ki)),   # key coords + ones
            pl.BlockSpec((2, TQ), lambda b, qi, ki: (0, qi)),   # query coords
        ],
        out_specs=pl.BlockSpec((None, 2, TQ), lambda b, qi, ki: (b, 0, qi)),
        scratch_shapes=[
            pltpu.VMEM((1, TQ), jnp.float32),   # running max
            pltpu.VMEM((3, TQ), jnp.float32),   # running [sum p*x, sum p*y, sum p]
        ],
        compiler_params=pltpu.CompilerParams(
            dimension_semantics=("parallel", "parallel", "arbitrary")),
    )(feats, feats, ckv, cq)

    # scale 1/8-grid flow to pixels and upsample to full resolution (glue).
    flow8 = flow_q[:, :, :N8].reshape(B, 2, H8, W8) * 8.0
    flow = jax.image.resize(flow8, (B, 2, Hp, Wp), method="bilinear")
    return flow[:, :, :H, :W]


def raft_ibvs_forward(tar_img, cur_img, wf):
    tar_img = preprocess(tar_img)
    cur_img = preprocess(cur_img)
    flow = predict_flow(tar_img, cur_img, wf)   # transforms folded into the kernel path
    return [flow]                               # list_of_flows


def ibvs_velocities(pos_cur_pix, pos_tar_pix, dist_scale, intrinsic):
    """pos_*_pix: (B, N, 2) pixel coords; dist_scale: scalar or (B,); returns (B, 6)."""
    B, N, _ = pos_cur_pix.shape
    npad = _round_up(max(N, 1), 128)

    pts = jnp.zeros((B, 8, npad), jnp.float32)
    pts = pts.at[:, 0, :N].set(pos_cur_pix[:, :, 0])
    pts = pts.at[:, 1, :N].set(pos_cur_pix[:, :, 1])
    pts = pts.at[:, 2, :N].set(pos_tar_pix[:, :, 0])
    pts = pts.at[:, 3, :N].set(pos_tar_pix[:, :, 1])
    pts = pts.at[:, 4, :N].set(1.0)

    ds = jnp.asarray(dist_scale, jnp.float32)
    if ds.ndim == 0:
        ds = jnp.full((B,), ds, jnp.float32)
    z = jnp.stack([ds, ds], axis=-1)                             # (B, 2) = (Z_cur, Z_tar)
    intr = jnp.array([intrinsic["cx"], intrinsic["cy"],
                      intrinsic["fx"], intrinsic["fy"]], jnp.float32)

    G = pl.pallas_call(
        _ibvs_kernel,
        out_shape=jax.ShapeDtypeStruct((B, 8, 8), jnp.float32),
        grid=(B,),
        in_specs=[
            pl.BlockSpec(memory_space=pltpu.MemorySpace.SMEM),   # z (B, 2)
            pl.BlockSpec(memory_space=pltpu.MemorySpace.SMEM),   # intr (4,)
            pl.BlockSpec((None, 8, npad), lambda b: (b, 0, 0)),  # packed points
        ],
        out_specs=pl.BlockSpec((None, 8, 8), lambda b: (b, 0, 0)),
        scratch_shapes=[pltpu.VMEM((8, 2 * npad), jnp.float32)],
        compiler_params=pltpu.CompilerParams(dimension_semantics=("parallel",)),
    )(z, intr, pts)

    # TODO(synk): torch.linalg.lstsq (QR/SVD) is approximated by a normal-equation
    # solve of the in-kernel reduced system; identical for full-rank point sets.
    G6 = G[:, :6, :6]
    b6 = G[:, :6, 6:7]
    return jnp.linalg.solve(G6, b6)[..., 0]                      # (B, 6)


def raft_ibvs_postprocess(raw_pred, intrinsic, dist_scale):
    flows = raw_pred[-1]
    # TODO(synk): flow_to_color / cv2.imshow visualization has no Pallas/JAX equivalent.
    B, _, H, W = flows.shape
    h2, w2 = int(H * 0.1), int(W * 0.1)

    # F.interpolate(scale_factor=0.1, bilinear, align_corners=False):
    # src coord = (i + 0.5)/0.1 - 0.5 = 10*i + 4.5  ->  0.5/0.5 blend of 4 neighbours.
    iy = jnp.minimum(10 * jnp.arange(h2) + 4, H - 2)
    ix = jnp.minimum(10 * jnp.arange(w2) + 4, W - 2)

    def sample(img):
        g00 = img[:, :, iy, :][:, :, :, ix]
        g01 = img[:, :, iy, :][:, :, :, ix + 1]
        g10 = img[:, :, iy + 1, :][:, :, :, ix]
        g11 = img[:, :, iy + 1, :][:, :, :, ix + 1]
        return 0.25 * (g00 + g01 + g10 + g11)

    flow_s = sample(flows)                                       # (B, 2, h2, w2)

    # the bilinearly sampled identity coords grid is analytic: value at src 10*i + 4.5
    xs = jnp.broadcast_to((10.0 * jnp.arange(w2) + 4.5)[None, :], (h2, w2))
    ys = jnp.broadcast_to((10.0 * jnp.arange(h2) + 4.5)[:, None], (h2, w2))
    pos_tar = jnp.broadcast_to(jnp.stack([xs, ys], axis=0), (B, 2, h2, w2))
    pos_cur = pos_tar + flow_s

    pos_tar = pos_tar.reshape(B, 2, -1).transpose(0, 2, 1)       # b (h w) c
    pos_cur = pos_cur.reshape(B, 2, -1).transpose(0, 2, 1)
    # TODO(synk): cv2.findEssentialMat RANSAC inlier mask (ransac_pos) has no JAX/Pallas
    # equivalent; all sampled points are kept (mask = all ones).
    return ibvs_velocities(pos_cur, pos_tar, dist_scale, intrinsic)


if __name__ == "__main__":
    key = jax.random.PRNGKey(0)
    B, C, H, W = 2, 3, 48, 48
    k1, k2, k3 = jax.random.split(key, 3)
    tar_img = jax.random.uniform(k1, (B, C, H, W), jnp.float32)
    cur_img = jax.random.uniform(k2, (B, C, H, W), jnp.float32)

    # deterministic synthetic feature-projection weights (RAFT hot-path stand-in).
    D = 128
    wf = 0.5 * jax.random.normal(k3, (C, D), jnp.float32)

    list_of_flows = raft_ibvs_forward(tar_img, cur_img, wf)
    intrinsic = {"fx": 40.0, "fy": 40.0, "cx": W / 2.0, "cy": H / 2.0}
    dist_scale = jnp.array([1.5, 2.0], jnp.float32)
    vels = raft_ibvs_postprocess(list_of_flows, intrinsic, dist_scale)

    jax.block_until_ready(list_of_flows[-1])
    jax.block_until_ready(vels)
    assert list_of_flows[-1].shape == (B, 2, H, W)
    assert vels.shape == (B, 6)
    print("KERNEL_OK")
</pallas_src>

<mosaic_0001>
module attributes {stable_mosaic.version = 11 : i64} {
  func.func @_project_kernel(%arg0: i32, %arg1: memref<1x128x8xbf16, #tpu.memory_space<vmem>>, %arg2: memref<8x128xbf16, #tpu.memory_space<vmem>>, %arg3: memref<1x128xf32, #tpu.memory_space<vmem>>, %arg4: memref<1x128x128xbf16, #tpu.memory_space<vmem>>) attributes {dimension_semantics = [#tpu.dimension_semantics<parallel>], iteration_bounds = array<i64: 4>, scalar_prefetch = 0 : i64, scratch_operands = 0 : i64, tpu.core_type = #tpu.core_type<tc>, window_params = [{transform_indices = @transform_0, window_bounds = array<i64: 1, 128, 8>}, {pipeline_mode = #tpu.pipeline_mode<synchronous>, transform_indices = @transform_1, window_bounds = array<i64: 8, 128>}, {pipeline_mode = #tpu.pipeline_mode<synchronous>, transform_indices = @transform_2, window_bounds = array<i64: 1, 128>}, {transform_indices = @transform_3, window_bounds = array<i64: 1, 128, 128>}]} {
    %c0 = arith.constant 0 : index
    %c0_0 = arith.constant 0 : index
    %c0_1 = arith.constant 0 : index
    %0 = vector.load %arg1[%c0, %c0_0, %c0_1] : memref<1x128x8xbf16, #tpu.memory_space<vmem>>, vector<1x128x8xbf16>
    %1 = vector.shape_cast %0 : vector<1x128x8xbf16> to vector<128x8xbf16>
    %c0_2 = arith.constant 0 : index
    %c0_3 = arith.constant 0 : index
    %2 = vector.load %arg2[%c0_2, %c0_3] : memref<8x128xbf16, #tpu.memory_space<vmem>>, vector<8x128xbf16>
    %cst = arith.constant dense<0.000000e+00> : vector<128x128xf32>
    %3 = tpu.matmul %1, %2, %cst {dimension_numbers = #tpu.dot_dimension_numbers<[1], [0], [0], [1], [0, 0, 1, 1], [], []>} : vector<128x8xbf16>, vector<8x128xbf16>, vector<128x128xf32> -> vector<128x128xf32>
    %c0_4 = arith.constant 0 : index
    %c0_5 = arith.constant 0 : index
    %4 = vector.load %arg3[%c0_4, %c0_5] : memref<1x128xf32, #tpu.memory_space<vmem>>, vector<1x128xf32>
    %5 = vector.broadcast %4 : vector<1x128xf32> to vector<128x128xf32>
    %6 = arith.addf %3, %5 : vector<128x128xf32>
    %7 = arith.truncf %6 : vector<128x128xf32> to vector<128x128xbf16>
    %c0_6 = arith.constant 0 : index
    %c0_7 = arith.constant 0 : index
    %c0_8 = arith.constant 0 : index
    %8 = vector.load %arg4[%c0_6, %c0_7, %c0_8] : memref<1x128x128xbf16, #tpu.memory_space<vmem>>, vector<1x128x128xbf16>
    %9 = vector.shape_cast %8 : vector<1x128x128xbf16> to vector<128x128xbf16>
    %10 = vector.shape_cast %7 : vector<128x128xbf16> to vector<1x128x128xbf16>
    tpu.vector_store %arg4[%c0_6, %c0_7, %c0_8], %10 {strides = array<i32>} : memref<1x128x128xbf16, #tpu.memory_space<vmem>>, vector<1x128x128xbf16>,
    return
  }
  func.func @transform_0(%arg0: i32) -> (i32, i32, i32) {
    %c0_i32 = arith.constant 0 : i32
    %c0_i32_0 = arith.constant 0 : i32
    %c0_i32_1 = arith.constant 0 : i32
    return %arg0, %c0_i32, %c0_i32_0 : i32, i32, i32
  }
  func.func @transform_1(%arg0: i32) -> (i32, i32) {
    %c0_i32 = arith.constant 0 : i32
    %c0_i32_0 = arith.constant 0 : i32
    %c0_i32_1 = arith.constant 0 : i32
    return %c0_i32, %c0_i32_0 : i32, i32
  }
  func.func @transform_2(%arg0: i32) -> (i32, i32) {
    %c0_i32 = arith.constant 0 : i32
    %c0_i32_0 = arith.constant 0 : i32
    %c0_i32_1 = arith.constant 0 : i32
    return %c0_i32, %c0_i32_0 : i32, i32
  }
  func.func @transform_3(%arg0: i32) -> (i32, i32, i32) {
    %c0_i32 = arith.constant 0 : i32
    %c0_i32_0 = arith.constant 0 : i32
    %c0_i32_1 = arith.constant 0 : i32
    return %arg0, %c0_i32, %c0_i32_0 : i32, i32, i32
  }
}

</mosaic_0001>

<bundles_post_ra>
// kernel: tpu_custom_call.1
= control target key start
LH: loop header
LB: loop body
LE: loop exit
PB: predicated region body
PF: predicated region fallthrough
CT: control target
= control target key end

     0   :  { %8 = vsyncpa [#allocation3], 0  ;;  %s925_s0 = inlined_call_operand.vmem [shape: bf16[4,128,8], index: 0, kind: input, shape index: {}]   ;;  %s926_s1 = inlined_call_operand.vmem [shape: bf16[8,128], index: 1, kind: input, shape index: {}]   ;;  %s927_s2 = inlined_call_operand.vmem [shape: f32[1,128], index: 2, kind: input, shape index: {}]   ;;  %s928_s3 = inlined_call_operand.hbm [shape: bf16[4,128,128], index: 3, kind: output, shape index: {}]  }
   0x1   :  { %10 = vsyncpa [#allocation3 + $0x1], 0  ;;  %s793_s12 = smov 0   ;;  %s795_s13 = smov 0  }
   0x2   :  { %s797_s14 = smov 0   ;;  %s799_s15 = smov 0  }
   0x3 LB: > { %s814_s16 = sadd.s32 4294967295, %s768_s15   ;;  %s516_s17 = sadd.s32 4294967294, %s768_s15   ;;  %s768_s15 = sphi %s799_s15, %s934_s15   ;;  %s764_s14 = sphi %s797_s14, %s933_s14   ;;  %s760_s13 = sphi %s795_s13, %s932_s13   ;;  %s756_s12 = sphi %s793_s12, %s931_s12  }
   0x4   : > { %s818_s18 = sadd.s32 1, %s768_s15   ;;  %s91_s19 = sadd.s32 1, %s764_s14 }
   0x5   : > { %s88_s20 = ssub.s32 %s768_s15, %s818_s18  ;;  %p101_p0 = scmp.ne.s32.totalorder %s764_s14, %s760_s13 }
   0x6   : > { %p89_p1 = scmp.eq.s32.totalorder %s88_s20, 0  ;;  %p102_p2 = scmp.eq.s32.totalorder %s814_s16, 3 }
   0x7   : > { %p107_p3 = scmp.ne.s32.totalorder %s760_s13, %s756_s12  ;;  %p108_p4 = scmp.eq.s32.totalorder %s516_s17, 3 }
   0x8   : > { %s829_s21 = scalar_select %p89_p1, %s764_s14, %s91_s19  }
   0x9   : > { %p831_p5 = por %p102_p2, %p101_p0  ;;  %p835_p6 = por %p108_p4, %p107_p3 }
   0xa   : > { %p519_p7 = scmp.ge.s32.totalorder %s768_s15, 1  ;;  %p140_p8 = scmp.lt.s32.totalorder %s768_s15, 5 }
   0xc   : > { %p141_p9 = pnand %p519_p7, %p140_p8 }
   0xd   : > { %v186_v0 = vld [vmem:[%s926_s1] sm:$0xf] (!%p141_p9)  ;;  %vm259_vm0 = vcmask (!%p141_p9), 1043456   ;;  %p164_p10 = scmp.lt.s32.totalorder (!%p141_p9), %s814_s16, 3  ;;  %vm234_vm1 = vcmask (!%p141_p9), 64512   ;;  %s161_s4 = sand.u32 (!%p141_p9), 1, %s760_s13  }
   0xe   : > { %144 = sbr.rel (%p141_p9) target bundleno = 270 (0x10e), region = 32  ;;  %655 = vmatprep.subr.msk.bf16.mxu0 (!%p141_p9), %vm259_vm0, %v186_v0  ;;  %656 = vmatprep.subr.msk.bf16.mxu1 (!%p141_p9), %vm259_vm0, %v186_v0  ;;  %v261_v1 = vsel (!%p141_p9), %vm259_vm0, %v186_v0, 0  ;;  %v523_v11 = vld [vmem:[%s927_s2] ss:$0 sm:$0xff] (!%p141_p9)  ;;  %s520_s7 = sshll.u32 (!%p141_p9), %s161_s4, 6 }
   0xf   : > { %636 = vmatpush3.bf16.msra.mxu0 (!%p141_p9), %v261_v1  ;;  %654 = vmatpush3.bf16.msra.mxu1 (!%p141_p9), %v261_v1  ;;  %s863_s8 = scalar_lea.vmem (!%p141_p9), [#allocation2], %s520_s7  ;;  %s578_s9 = sshll.u32 (!%p141_p9), %s814_s16, 10 }
  0x10   : > { %s454_s10 = sshll.u32 (!%p141_p9), %s863_s8, 4  ;;  %s884_s19 = scalar_lea.sflag (!%p141_p9), [#allocation3], %s161_s4  ;;  %s876_s10 = int_to_ptr.vmem [resolvable:$true] %s454_s10 }
  0x11   : > { %s706_s20 = scalar_lea.vmem (!%p141_p9), %s876_s10, 1024  ;;  %s770_s24 = smov (!%p141_p9), [#allocation2]  }
  0x12   : > { %p707_p11 = scmp.ne.s32.totalorder (!%p141_p9), %s876_s10, %s706_s20  ;;  %s710_s25 = sshll.u32 (!%p141_p9), %s770_s24, 4  ;;  %s711_s25 = int_to_ptr.vmem [resolvable:$false] %s710_s25 }
  0x13   : > { %p713_p0 = scmp.lt.s32.totalorder (!%p141_p9), %s876_s10, %s711_s25 }
  0x14   : > { %p708_p12 = pnand (!%p141_p9), %p707_p11, %p831_p5 }
  0x15   : > { %s165_s26 = scalar_select %p164_p10, %s814_s16, 3 }
  0x16   : > { %s874_s16 = scalar_lea.hbm %s928_s3, %s578_s9  ;;  %p709_p13 = pneg %p708_p12 }
  0x17   : > { %s561_s27 = sshll.u32 %s165_s26, 6  ;;  %s712_s26 = scalar_lea.vmem %s711_s25, 2048 }
  0x18   : > { %s168_s30 = scalar_lea.vmem %s925_s0, %s561_s27  ;;  %p714_p1 = scmp.lt.s32.totalorder %s712_s26, %s706_s20 }
  0x19   : > { %v698_v2 = vld [vmem:[%s168_s30] sm:$0xff]   ;;  %v700_v4 = vld [vmem:[%s168_s30 + $0x8] sm:$0xff]   ;;  %v702_v6 = vld [vmem:[%s168_s30 + $0x10] sm:$0xff]  }
  0x1a   : > { %v699_v3 = vld [vmem:[%s168_s30 + $0x20] sm:$0xff]   ;;  %637 = vmatprep.mubr.msk.bf16.mxu0 %vm234_vm1, %v698_v2  ;;  %v701_v5 = vld [vmem:[%s168_s30 + $0x28] sm:$0xff]   ;;  %v703_v7 = vld [vmem:[%s168_s30 + $0x30] sm:$0xff]   ;;  %p715_p2 = por %p714_p1, %p713_p0 }
  0x1b   : > { %645 = vmatprep.mubr.msk.bf16.mxu1 %vm234_vm1, %v699_v3  ;;  %638 = vmatmul.mubr.msk.bf16.vlgmr.msra.gmra.mrb[0].mxu0 %vm234_vm1, %v700_v4  ;;  %v704_v8 = vld [vmem:[%s168_s30 + $0x18] sm:$0xff]  }
  0x1c   : > { %646 = vmatmul.mubr.msk.bf16.vlgmr.msra.gmra.mrb[0].mxu1 %vm234_vm1, %v701_v5  ;;  %641 = vmatprep.mubr.msk.bf16.mxu0 %vm234_vm1, %v702_v6  ;;  %v705_v9 = vld [vmem:[%s168_s30 + $0x38] sm:$0xff]   ;;  %p716_p3 = pnand %p715_p2, %p709_p13 }
  0x1d   : > { %649 = vmatprep.mubr.msk.bf16.mxu1 %vm234_vm1, %v703_v7 }
  0x23   : > { %642 = vmatmul.mubr.msk.bf16.gmra.mrb[4].mxu0 %vm234_vm1, %v704_v8 }
  0x24   : > { %650 = vmatmul.mubr.msk.bf16.gmra.mrb[4].mxu1 %vm234_vm1, %v705_v9 }
  0xee   : > { %v639_v10 = vpop.f32.mrb[0].mxu0 }
  0xef   : > { %v647_v12 = vpop.f32.mrb[0].mxu1  ;;  %v297_v13 = vpop.f32.mrb[1].mxu0  ;;  %v306_v16 = vadd.f32 %v639_v10, %v523_v11 }
  0xf0   : > { %v329_v14 = vpop.f32.mrb[1].mxu1  ;;  %v640_v15 = vpop.f32.mrb[2].mxu0  ;;  %v338_v20 = vadd.f32 %v647_v12, %v523_v11  ;;  %v298_v21 = vadd.f32 %v523_v11, %v297_v13 }
  0xf1   : > { %v309_v17 = vadd.f32 %v640_v15, %v523_v11  ;;  %v648_v18 = vpop.f32.mrb[2].mxu1  ;;  %v300_v19 = vpop.f32.mrb[3].mxu0  ;;  %v330_v25 = vadd.f32 %v523_v11, %v329_v14 }
  0xf2   : > { %v341_v22 = vadd.f32 %v648_v18, %v523_v11  ;;  %v301_v23 = vadd.f32 %v523_v11, %v300_v19  ;;  %v332_v24 = vpop.f32.mrb[3].mxu1 }
  0xf3   : > { %v587_v26 = vpack.c.bf16 %v309_v17, %v306_v16  ;;  %v333_v27 = vadd.f32 %v523_v11, %v332_v24 }
  0xf4   : > { %v607_v28 = vpack.c.bf16 %v341_v22, %v338_v20  ;;  %v582_v29 = vpack.c.bf16 %v301_v23, %v298_v21 }
  0xf5   : > { %619 = vst [vmem:[%s863_s8 + $0x8] sm:$0xff] %v587_v26   ;;  %v602_v30 = vpack.c.bf16 %v333_v27, %v330_v25 }
  0xf6   : > { %623 = vst [vmem:[%s863_s8 + $0x28] sm:$0xff] %v607_v28   ;;  %583 = vst [vmem:[%s863_s8] sm:$0xff] %v582_v29   ;;  %v643_v31 = vpop.f32.mrb[4].mxu0 }
  0xf7   : > { %622 = vst [vmem:[%s863_s8 + $0x20] sm:$0xff] %v602_v30   ;;  %v651_v32 = vpop.f32.mrb[4].mxu1  ;;  %v313_v33 = vpop.f32.mrb[5].mxu0  ;;  %v322_v36 = vadd.f32 %v643_v31, %v523_v11 }
  0xf8   : > { %v345_v34 = vpop.f32.mrb[5].mxu1  ;;  %v644_v35 = vpop.f32.mrb[6].mxu0  ;;  %v354_v40 = vadd.f32 %v651_v32, %v523_v11  ;;  %v314_v41 = vadd.f32 %v523_v11, %v313_v33 }
  0xf9   : > { %v325_v37 = vadd.f32 %v644_v35, %v523_v11  ;;  %v652_v38 = vpop.f32.mrb[6].mxu1  ;;  %v316_v39 = vpop.f32.mrb[7].mxu0  ;;  %v346_v45 = vadd.f32 %v523_v11, %v345_v34 }
  0xfa   : > { %v357_v42 = vadd.f32 %v652_v38, %v523_v11  ;;  %v317_v43 = vadd.f32 %v523_v11, %v316_v39  ;;  %v348_v44 = vpop.f32.mrb[7].mxu1 }
  0xfb   : > { %v597_v46 = vpack.c.bf16 %v325_v37, %v322_v36  ;;  %v349_v47 = vadd.f32 %v523_v11, %v348_v44 }
  0xfc   : > { %v617_v48 = vpack.c.bf16 %v357_v42, %v354_v40  ;;  %v592_v49 = vpack.c.bf16 %v317_v43, %v314_v41 }
  0xfd   : > { %621 = vst [vmem:[%s863_s8 + $0x18] sm:$0xff] %v597_v46   ;;  %v612_v50 = vpack.c.bf16 %v349_v47, %v346_v45 }
  0xfe   : > { %625 = vst [vmem:[%s863_s8 + $0x38] sm:$0xff] %v617_v48   ;;  %620 = vst [vmem:[%s863_s8 + $0x10] sm:$0xff] %v592_v49  }
  0xff   : > { %624 = vst [vmem:[%s863_s8 + $0x30] sm:$0xff] %v612_v50  }
 0x100   : > { %719 = shalt.err (!%p716_p3)
}
 0x101   : > { %s720_s27 = scalar_lea.hbm %s874_s16, 1024  ;;  %s724_s30 = scalar_lea.hbm %s928_s3, 4096 }
 0x102   : > { %p721_p4 = scmp.ne.s32.totalorder %s874_s16, %s720_s27  ;;  %p725_p9 = scmp.lt.u32.totalorder %s874_s16, %s928_s3 }
 0x103   : > { %p726_p10 = scmp.lt.u32.totalorder %s724_s30, %s720_s27  ;;  %p728_p12 = scmp.lt.u32.totalorder %s720_s27, %s874_s16 }
 0x104   : > { %p722_p7 = pnand %p721_p4, %p831_p5 }
 0x105   : > { %p727_p11 = por %p726_p10, %p725_p9 }
 0x106   : > { %p723_p8 = pneg %p722_p7 }
 0x107   : > { %p729_p13 = por %p728_p12, %p727_p11 }
 0x109   : > { %p730_p0 = pnand %p729_p13, %p723_p8 }
 0x10b   : > { %733 = shalt.err (!%p730_p0)
}
 0x10c   : > { %s771_s6 = smov 64   ;;  %s772_s7 = smov 4  }
 0x10d   : > { %657 = dma.vmem_to_hbm [thread:$0]  (%p831_p5), %s876_s10, 1024, %s874_s16, %s884_s19, %s771_s6, %s771_s6, %s772_s7  }
 0x10e PF: > { %p663_p1 = scmp.ge.s32.totalorder %s768_s15, 2  ;;  %s469_s8 = sand.u32 1, %s756_s12  }
 0x10f   : > { %s470_s9 = scalar_lea.sflag [#allocation3], %s469_s8 }
 0x110   : > { %p660_p2 = pnand %p663_p1, %p835_p6 }
 0x112   : > { %751 = dma.done.wait (!%p660_p2), %s470_s9, 1024  }
 0x113   : > { %753 = vsyncadd (!%p660_p2), %s470_s9, 4294966272  ;;  %p13_p3 = scmp.ge.s32.totalorder %s818_s18, 6   ;;  %s931_s12 = smov %s760_s13 }
 0x114   : > { %s932_s13 = smov %s764_s14  ;;  %s933_s14 = smov %s829_s21 }
 0x115   : > { %s934_s15 = smov %s818_s18  ;;  %15 = sbr.rel (!%p13_p3) target bundleno = 3 (0x3), region = 67 }
 0x11c   :  { %475 = vsyncpa [#allocation3], 1 }
 0x11d   :  { %477 = vsyncpa [#allocation3 + $0x1], 1 }

</bundles_post_ra>
